<compile_context>
chip_gen: v6e
topology: v6e:2x2x1
jax: 0.10.0
libtpu: 0.0.40
codegen_flags: <defaults>
</compile_context>

<pallas_src>
import jax
import jax.numpy as jnp
from jax import lax
from jax.experimental import pallas as pl
from jax.experimental.pallas import tpu as pltpu


def _attention_kernel(xq_ref,    # (1, C, TQ)  query-tile slice of x
                      xk_ref,    # (1, C, N)   full x (keys / values source)
                      a_ref,     # (C, C)      scale * Wq^T Wk
                      u_ref,     # (1, C)      scale * bq^T Wk
                      wv_ref,    # (C, C)      Wv
                      bv_ref,    # (C, 1)      bv
                      wog_ref,   # (C, C)      gamma * Wo
                      bog_ref,   # (C, 1)      gamma * bo
                      out_ref):  # (1, C, TQ)
    xq = xq_ref[0]                                   # (C, TQ) lane-dense
    xk = xk_ref[0]                                   # (C, N)  lane-dense

    # logits[m, n] = x_qm^T A x_n + u . x_n   (row-constant bias terms cancel
    # in the softmax and are omitted).  Only the small (C, TQ) query tile is
    # transposed (XLU); all matmuls are standard / transposed-RHS forms.
    q_t = jnp.transpose(xq)                          # (TQ, C)
    qa = jnp.dot(q_t, a_ref[...],
                 preferred_element_type=jnp.float32)           # (TQ, C)
    logits = jnp.dot(qa, xk,
                     preferred_element_type=jnp.float32)       # (TQ, N)
    logits = logits + jnp.dot(u_ref[...], xk,
                              preferred_element_type=jnp.float32)  # (1, N) bcast

    # Softmax over the key axis (lanes), f32 throughout.
    logits = logits - jnp.max(logits, axis=-1, keepdims=True)
    p = jnp.exp(logits)
    p = p * pl.reciprocal(jnp.sum(p, axis=-1, keepdims=True), approx=True)

    # Value projection (channel-major) and attention-weighted sum.
    v = jnp.dot(wv_ref[...], xk,
                preferred_element_type=jnp.float32) + bv_ref[...]  # (C, N)
    # o[c, m] = sum_n v[c, n] * p[m, n]  -> contract last dims (no transpose).
    o = lax.dot_general(v, p, (((1,), (1,)), ((), ())),
                        preferred_element_type=jnp.float32)        # (C, TQ)

    # Output 1x1 conv with gamma folded in, plus residual.
    y = jnp.dot(wog_ref[...], o,
                preferred_element_type=jnp.float32) + bog_ref[...]  # (C, TQ)
    out_ref[0] = y + xq


def enhanced_q_self_attention(x_nchw, params):
    """x_nchw: (B, C, H, W) float32. params: PyTorch-layout weights (see init)."""
    B, C, H, W = x_nchw.shape
    Ck = C // 8
    N = H * W
    scale = float(Ck) ** -0.5

    # NCHW -> (B, C, N): pure reshape, no transpose, no extra HBM pass.
    x_cn = x_nchw.reshape(B, C, N)

    wq, bq = params["wq"], params["bq"]              # (Ck, C), (Ck,)
    wk, bk = params["wk"], params["bk"]              # (Ck, C), (Ck,)
    wv = params["wv"]                                # (C, C)
    bv = params["bv"].reshape(C, 1)                  # (C, 1)
    gamma = params["gamma"][0]

    # Fused / folded weights (tiny, done once in the wrapper).
    a_s = (scale * (wq.T @ wk)).astype(jnp.float32)          # (C, C)
    u_row = (scale * (bq @ wk)).reshape(1, C).astype(jnp.float32)  # (1, C)
    wog = (gamma * params["wo"]).astype(jnp.float32)         # (C, C)
    bog = (gamma * params["bo"]).reshape(C, 1).astype(jnp.float32)

    # Query tiling: keep the logits block (TQ, N) instead of (N, N).
    tq = 128 if (N % 128 == 0) else N
    nq = N // tq

    out_cn = pl.pallas_call(
        _attention_kernel,
        out_shape=jax.ShapeDtypeStruct((B, C, N), jnp.float32),
        grid_spec=pltpu.PrefetchScalarGridSpec(
            num_scalar_prefetch=0,
            grid=(B, nq),
            in_specs=[
                pl.BlockSpec((1, C, tq), lambda b, qi: (b, 0, qi)),   # x (query tile)
                pl.BlockSpec((1, C, N), lambda b, qi: (b, 0, 0)),     # x (keys/values)
                pl.BlockSpec((C, C), lambda b, qi: (0, 0)),           # A = scale*Wq^T Wk
                pl.BlockSpec((1, C), lambda b, qi: (0, 0)),           # u = scale*bq^T Wk
                pl.BlockSpec((C, C), lambda b, qi: (0, 0)),           # Wv
                pl.BlockSpec((C, 1), lambda b, qi: (0, 0)),           # bv
                pl.BlockSpec((C, C), lambda b, qi: (0, 0)),           # gamma*Wo
                pl.BlockSpec((C, 1), lambda b, qi: (0, 0)),           # gamma*bo
            ],
            out_specs=pl.BlockSpec((1, C, tq), lambda b, qi: (b, 0, qi)),
        ),
        compiler_params=pltpu.CompilerParams(
            dimension_semantics=("parallel", "parallel")),
    )(x_cn, x_cn, a_s, u_row, wv, bv, wog, bog)

    # (B, C, N) -> NCHW: free reshape.
    return out_cn.reshape(B, C, H, W)


def init_params(key, in_channels, gamma_value=0.0):
    """PyTorch-layout parameters: Conv2d weights stored as (out, in)."""
    C = in_channels
    Ck = C // 8
    ks = jax.random.split(key, 8)
    s = 0.05
    return {
        "wq": s * jax.random.normal(ks[0], (Ck, C), jnp.float32),
        "bq": s * jax.random.normal(ks[1], (Ck,), jnp.float32),
        "wk": s * jax.random.normal(ks[2], (Ck, C), jnp.float32),
        "bk": s * jax.random.normal(ks[3], (Ck,), jnp.float32),
        "wv": s * jax.random.normal(ks[4], (C, C), jnp.float32),
        "bv": s * jax.random.normal(ks[5], (C,), jnp.float32),
        "wo": s * jax.random.normal(ks[6], (C, C), jnp.float32),
        "bo": s * jax.random.normal(ks[7], (C,), jnp.float32),
        # PyTorch init: gamma = zeros(1); gamma_value lets the verification
        # run exercise the attention path.
        "gamma": jnp.full((1,), gamma_value, jnp.float32),
    }


def reference_nchw(x, p):
    """Pure-JAX NCHW reference mirroring the PyTorch forward."""
    B, C, H, W = x.shape
    Ck = C // 8
    N = H * W
    conv1x1 = lambda inp, w, b: jnp.einsum("bchw,oc->bohw", inp, w) + b[None, :, None, None]
    q = conv1x1(x, p["wq"], p["bq"]).reshape(B, Ck, N).transpose(0, 2, 1)   # (B,N,Ck)
    k = conv1x1(x, p["wk"], p["bk"]).reshape(B, Ck, N)                      # (B,Ck,N)
    v = conv1x1(x, p["wv"], p["bv"]).reshape(B, C, N).transpose(0, 2, 1)    # (B,N,C)
    attn = jnp.einsum("bnk,bkm->bnm", q, k) * (Ck ** -0.5)
    attn = jax.nn.softmax(attn, axis=-1)
    out = jnp.einsum("bnm,bmc->bnc", attn, v)                               # (B,N,C)
    out = out.transpose(0, 2, 1).reshape(B, C, H, W)
    out = conv1x1(out, p["wo"], p["bo"])
    return p["gamma"][0] * out + x


if __name__ == "__main__":
    B, C, H, W = 2, 32, 16, 16   # key_channels = C // 8 = 4, N = 256
    key = jax.random.PRNGKey(0)
    kx, kp = jax.random.split(key)
    x = jax.random.normal(kx, (B, C, H, W), jnp.float32)

    # Tolerance slightly relaxed vs 1e-4 to cover the approximate (EUP)
    # reciprocal in the softmax; all math otherwise f32.
    tol = dict(atol=2e-3, rtol=2e-3)

    # Module-faithful run (gamma initialized to 0 as in PyTorch __init__).
    params0 = init_params(kp, C, gamma_value=0.0)
    out0 = jax.block_until_ready(enhanced_q_self_attention(x, params0))
    ref0 = reference_nchw(x, params0)
    assert jnp.allclose(out0, ref0, **tol), float(jnp.max(jnp.abs(out0 - ref0)))

    # Verification run with nonzero gamma so the attention path affects output.
    params1 = init_params(kp, C, gamma_value=0.7)
    out1 = jax.block_until_ready(enhanced_q_self_attention(x, params1))
    ref1 = reference_nchw(x, params1)
    assert jnp.allclose(out1, ref1, **tol), float(jnp.max(jnp.abs(out1 - ref1)))

    print("KERNEL_OK")
</pallas_src>

<mosaic_0001>
module attributes {stable_mosaic.version = 11 : i64} {
  func.func @_attention_kernel(%arg0: i32, %arg1: i32, %arg2: memref<1x32x128xf32, #tpu.memory_space<vmem>>, %arg3: memref<1x32x256xf32, #tpu.memory_space<vmem>>, %arg4: memref<32x32xf32, #tpu.memory_space<vmem>>, %arg5: memref<1x32xf32, #tpu.memory_space<vmem>>, %arg6: memref<32x32xf32, #tpu.memory_space<vmem>>, %arg7: memref<32x1xf32, #tpu.memory_space<vmem>>, %arg8: memref<32x32xf32, #tpu.memory_space<vmem>>, %arg9: memref<32x1xf32, #tpu.memory_space<vmem>>, %arg10: memref<1x32x128xf32, #tpu.memory_space<vmem>>) attributes {dimension_semantics = [#tpu.dimension_semantics<parallel>, #tpu.dimension_semantics<parallel>], iteration_bounds = array<i64: 2, 2>, scalar_prefetch = 0 : i64, scratch_operands = 0 : i64, tpu.core_type = #tpu.core_type<tc>, window_params = [{transform_indices = @transform_0, window_bounds = array<i64: 1, 32, 128>}, {transform_indices = @transform_1, window_bounds = array<i64: 1, 32, 256>}, {pipeline_mode = #tpu.pipeline_mode<synchronous>, transform_indices = @transform_2, window_bounds = array<i64: 32, 32>}, {pipeline_mode = #tpu.pipeline_mode<synchronous>, transform_indices = @transform_3, window_bounds = array<i64: 1, 32>}, {pipeline_mode = #tpu.pipeline_mode<synchronous>, transform_indices = @transform_4, window_bounds = array<i64: 32, 32>}, {pipeline_mode = #tpu.pipeline_mode<synchronous>, transform_indices = @transform_5, window_bounds = array<i64: 32, 1>}, {pipeline_mode = #tpu.pipeline_mode<synchronous>, transform_indices = @transform_6, window_bounds = array<i64: 32, 32>}, {pipeline_mode = #tpu.pipeline_mode<synchronous>, transform_indices = @transform_7, window_bounds = array<i64: 32, 1>}, {transform_indices = @transform_8, window_bounds = array<i64: 1, 32, 128>}]} {
    %c0 = arith.constant 0 : index
    %c0_0 = arith.constant 0 : index
    %c0_1 = arith.constant 0 : index
    %0 = vector.load %arg2[%c0, %c0_0, %c0_1] : memref<1x32x128xf32, #tpu.memory_space<vmem>>, vector<1x32x128xf32>
    %1 = vector.shape_cast %0 : vector<1x32x128xf32> to vector<32x128xf32>
    %c0_2 = arith.constant 0 : index
    %c0_3 = arith.constant 0 : index
    %c0_4 = arith.constant 0 : index
    %2 = vector.load %arg3[%c0_2, %c0_3, %c0_4] : memref<1x32x256xf32, #tpu.memory_space<vmem>>, vector<1x32x256xf32>
    %3 = vector.shape_cast %2 : vector<1x32x256xf32> to vector<32x256xf32>
    %4 = tpu.transpose %1, [1, 0] : vector<32x128xf32> -> vector<128x32xf32>
    %c0_5 = arith.constant 0 : index
    %c0_6 = arith.constant 0 : index
    %5 = vector.load %arg4[%c0_5, %c0_6] : memref<32x32xf32, #tpu.memory_space<vmem>>, vector<32x32xf32>
    %cst = arith.constant dense<0.000000e+00> : vector<128x32xf32>
    %6 = tpu.matmul %4, %5, %cst {dimension_numbers = #tpu.dot_dimension_numbers<[1], [0], [0], [1], [0, 0, 1, 1], [], []>} : vector<128x32xf32>, vector<32x32xf32>, vector<128x32xf32> -> vector<128x32xf32>
    %cst_7 = arith.constant dense<0.000000e+00> : vector<128x256xf32>
    %7 = tpu.matmul %6, %3, %cst_7 {dimension_numbers = #tpu.dot_dimension_numbers<[1], [0], [0], [1], [0, 0, 1, 1], [], []>} : vector<128x32xf32>, vector<32x256xf32>, vector<128x256xf32> -> vector<128x256xf32>
    %c0_8 = arith.constant 0 : index
    %c0_9 = arith.constant 0 : index
    %8 = vector.load %arg5[%c0_8, %c0_9] : memref<1x32xf32, #tpu.memory_space<vmem>>, vector<1x32xf32>
    %cst_10 = arith.constant dense<0.000000e+00> : vector<1x256xf32>
    %9 = tpu.matmul %8, %3, %cst_10 {dimension_numbers = #tpu.dot_dimension_numbers<[1], [0], [0], [1], [0, 0, 1, 1], [], []>} : vector<1x32xf32>, vector<32x256xf32>, vector<1x256xf32> -> vector<1x256xf32>
    %10 = vector.broadcast %9 : vector<1x256xf32> to vector<128x256xf32>
    %11 = arith.addf %7, %10 : vector<128x256xf32>
    %cst_11 = arith.constant dense<0xFF800000> : vector<128xf32>
    %12 = vector.multi_reduction <maximumf>, %11, %cst_11 [1] : vector<128x256xf32> to vector<128xf32>
    %13 = vector.shape_cast %12 : vector<128xf32> to vector<128x1xf32>
    %14 = vector.broadcast %13 : vector<128x1xf32> to vector<128x256xf32>
    %15 = arith.subf %11, %14 : vector<128x256xf32>
    %16 = math.exp %15 : vector<128x256xf32>
    %cst_12 = arith.constant dense<0.000000e+00> : vector<128xf32>
    %17 = vector.multi_reduction <add>, %16, %cst_12 [1] : vector<128x256xf32> to vector<128xf32>
    %18 = vector.shape_cast %17 : vector<128xf32> to vector<128x1xf32>
    %19 = tpu.reciprocal %18 {approx = true} : vector<128x1xf32> -> vector<128x1xf32>
    %20 = vector.broadcast %19 : vector<128x1xf32> to vector<128x256xf32>
    %21 = arith.mulf %16, %20 : vector<128x256xf32>
    %c0_13 = arith.constant 0 : index
    %c0_14 = arith.constant 0 : index
    %22 = vector.load %arg6[%c0_13, %c0_14] : memref<32x32xf32, #tpu.memory_space<vmem>>, vector<32x32xf32>
    %cst_15 = arith.constant dense<0.000000e+00> : vector<32x256xf32>
    %23 = tpu.matmul %22, %3, %cst_15 {dimension_numbers = #tpu.dot_dimension_numbers<[1], [0], [0], [1], [0, 0, 1, 1], [], []>} : vector<32x32xf32>, vector<32x256xf32>, vector<32x256xf32> -> vector<32x256xf32>
    %c0_16 = arith.constant 0 : index
    %c0_17 = arith.constant 0 : index
    %24 = vector.load %arg7[%c0_16, %c0_17] : memref<32x1xf32, #tpu.memory_space<vmem>>, vector<32x1xf32>
    %25 = vector.broadcast %24 : vector<32x1xf32> to vector<32x256xf32>
    %26 = arith.addf %23, %25 : vector<32x256xf32>
    %cst_18 = arith.constant dense<0.000000e+00> : vector<32x128xf32>
    %27 = tpu.matmul %26, %21, %cst_18 {dimension_numbers = #tpu.dot_dimension_numbers<[1], [1], [0], [0], [0, 0, 1, 0], [], []>} : vector<32x256xf32>, vector<128x256xf32>, vector<32x128xf32> -> vector<32x128xf32>
    %c0_19 = arith.constant 0 : index
    %c0_20 = arith.constant 0 : index
    %28 = vector.load %arg8[%c0_19, %c0_20] : memref<32x32xf32, #tpu.memory_space<vmem>>, vector<32x32xf32>
    %cst_21 = arith.constant dense<0.000000e+00> : vector<32x128xf32>
    %29 = tpu.matmul %28, %27, %cst_21 {dimension_numbers = #tpu.dot_dimension_numbers<[1], [0], [0], [1], [0, 0, 1, 1], [], []>} : vector<32x32xf32>, vector<32x128xf32>, vector<32x128xf32> -> vector<32x128xf32>
    %c0_22 = arith.constant 0 : index
    %c0_23 = arith.constant 0 : index
    %30 = vector.load %arg9[%c0_22, %c0_23] : memref<32x1xf32, #tpu.memory_space<vmem>>, vector<32x1xf32>
    %31 = vector.broadcast %30 : vector<32x1xf32> to vector<32x128xf32>
    %32 = arith.addf %29, %31 : vector<32x128xf32>
    %33 = arith.addf %32, %1 : vector<32x128xf32>
    %c0_24 = arith.constant 0 : index
    %c0_25 = arith.constant 0 : index
    %c0_26 = arith.constant 0 : index
    %34 = vector.load %arg10[%c0_24, %c0_25, %c0_26] : memref<1x32x128xf32, #tpu.memory_space<vmem>>, vector<1x32x128xf32>
    %35 = vector.shape_cast %34 : vector<1x32x128xf32> to vector<32x128xf32>
    %36 = vector.shape_cast %33 : vector<32x128xf32> to vector<1x32x128xf32>
    tpu.vector_store %arg10[%c0_24, %c0_25, %c0_26], %36 {strides = array<i32>} : memref<1x32x128xf32, #tpu.memory_space<vmem>>, vector<1x32x128xf32>,
    return
  }
  func.func @transform_0(%arg0: i32, %arg1: i32) -> (i32, i32, i32) {
    %c0_i32 = arith.constant 0 : i32
    %c0_i32_0 = arith.constant 0 : i32
    return %arg0, %c0_i32, %arg1 : i32, i32, i32
  }
  func.func @transform_1(%arg0: i32, %arg1: i32) -> (i32, i32, i32) {
    %c0_i32 = arith.constant 0 : i32
    %c0_i32_0 = arith.constant 0 : i32
    %c0_i32_1 = arith.constant 0 : i32
    return %arg0, %c0_i32, %c0_i32_0 : i32, i32, i32
  }
  func.func @transform_2(%arg0: i32, %arg1: i32) -> (i32, i32) {
    %c0_i32 = arith.constant 0 : i32
    %c0_i32_0 = arith.constant 0 : i32
    %c0_i32_1 = arith.constant 0 : i32
    return %c0_i32, %c0_i32_0 : i32, i32
  }
  func.func @transform_3(%arg0: i32, %arg1: i32) -> (i32, i32) {
    %c0_i32 = arith.constant 0 : i32
    %c0_i32_0 = arith.constant 0 : i32
    %c0_i32_1 = arith.constant 0 : i32
    return %c0_i32, %c0_i32_0 : i32, i32
  }
  func.func @transform_4(%arg0: i32, %arg1: i32) -> (i32, i32) {
    %c0_i32 = arith.constant 0 : i32
    %c0_i32_0 = arith.constant 0 : i32
    %c0_i32_1 = arith.constant 0 : i32
    return %c0_i32, %c0_i32_0 : i32, i32
  }
  func.func @transform_5(%arg0: i32, %arg1: i32) -> (i32, i32) {
    %c0_i32 = arith.constant 0 : i32
    %c0_i32_0 = arith.constant 0 : i32
    %c0_i32_1 = arith.constant 0 : i32
    return %c0_i32, %c0_i32_0 : i32, i32
  }
  func.func @transform_6(%arg0: i32, %arg1: i32) -> (i32, i32) {
    %c0_i32 = arith.constant 0 : i32
    %c0_i32_0 = arith.constant 0 : i32
    %c0_i32_1 = arith.constant 0 : i32
    return %c0_i32, %c0_i32_0 : i32, i32
  }
  func.func @transform_7(%arg0: i32, %arg1: i32) -> (i32, i32) {
    %c0_i32 = arith.constant 0 : i32
    %c0_i32_0 = arith.constant 0 : i32
    %c0_i32_1 = arith.constant 0 : i32
    return %c0_i32, %c0_i32_0 : i32, i32
  }
  func.func @transform_8(%arg0: i32, %arg1: i32) -> (i32, i32, i32) {
    %c0_i32 = arith.constant 0 : i32
    %c0_i32_0 = arith.constant 0 : i32
    return %arg0, %c0_i32, %arg1 : i32, i32, i32
  }
}

</mosaic_0001>

<bundles_post_ra>
// kernel: tpu_custom_call.1
= control target key start
LH: loop header
LB: loop body
LE: loop exit
PB: predicated region body
PF: predicated region fallthrough
CT: control target
= control target key end

     0   :  { %s2998_s0 = inlined_call_operand.hbm [shape: f32[2,32,256], index: 0, kind: input, shape index: {}]   ;;  %s2999_s1 = inlined_call_operand.hbm [shape: f32[2,32,256], index: 1, kind: input, shape index: {}]   ;;  %s3000_s2 = inlined_call_operand.vmem [shape: f32[32,32], index: 2, kind: input, shape index: {}]   ;;  %s3001_s3 = inlined_call_operand.vmem [shape: f32[1,32], index: 3, kind: input, shape index: {}]   ;;  %s3002_s4 = inlined_call_operand.vmem [shape: f32[32,32], index: 4, kind: input, shape index: {}]   ;;  %s3003_s5 = inlined_call_operand.vmem [shape: f32[32,1], index: 5, kind: input, shape index: {}]   ;;  %s3004_s6 = inlined_call_operand.hbm [shape: f32[32,32], index: 6, kind: input, shape index: {}]   ;;  %s3005_s7 = inlined_call_operand.vmem [shape: f32[32,1], index: 7, kind: input, shape index: {}]   ;;  %s3006_s8 = inlined_call_operand.hbm [shape: f32[2,32,256], index: 8, kind: output, shape index: {}]  }
   0x1   :  { %3022 = sst [smem:[#allocation20_spill]] %s3001_s3 }
   0x2   :  { %3023 = sst [smem:[#allocation21_spill]] %s3002_s4 }
   0x3   :  { %3024 = sst [smem:[#allocation22_spill]] %s3003_s5 }
   0x4   :  { %3025 = sst [smem:[#allocation23_spill]] %s3004_s6 }
   0x5   :  { %3026 = sst [smem:[#allocation24_spill]] %s3005_s7 }
   0x6   :  { %3027 = sst [smem:[#allocation25_spill]] %s3006_s8 }
   0x7   :  { %13 = vsyncpa [#allocation3], 0 }
   0x8   :  { %15 = vsyncpa [#allocation3 + $0x1], 0 }
   0x9   :  { %16 = vsyncpa [#allocation6], 0 }
   0xa   :  { %18 = vsyncpa [#allocation6 + $0x1], 0 }
   0xb   :  { %19 = vsyncpa [#allocation4], 0 }
   0xc   :  { %21 = vsyncpa [#allocation4 + $0x1], 0  ;;  %s2287_s27 = smov 0   ;;  %s2289_s28 = smov 0  }
   0xd   :  { %s2291_s29 = smov 0   ;;  %s2293_s30 = smov 0  }
   0xe   :  { %s2295_s9 = smov 0   ;;  %s2297_s10 = smov 0  }
   0xf   :  { %s2299_s11 = smov 0   ;;  %s2301_s12 = smov 0  }
  0x10   :  { %s2303_s13 = smov 0   ;;  %s2305_s14 = smov 0  }
  0x11   :  { %s2307_s15 = smov 0  }
  0x12 LB: > { %3028 = sst [smem:[#allocation13_spill]] %s2199_s30  ;;  %s2341_s16 = sadd.s32 4294967295, %s2227_s15   ;;  %s2227_s15 = sphi %s2307_s15, %s27_s15   ;;  %s2223_s14 = sphi %s2305_s14, %s3076_s14   ;;  %s2219_s13 = sphi %s2303_s13, %s3075_s13   ;;  %s2215_s12 = sphi %s2301_s12, %s3074_s12   ;;  %s2211_s11 = sphi %s2299_s11, %s3073_s11   ;;  %s2207_s10 = sphi %s2297_s10, %s3072_s10   ;;  %s2203_s9 = sphi %s2295_s9, %s3071_s9   ;;  %s2199_s30 = sphi %s2293_s30, %s3070_s30   ;;  %s2195_s29 = sphi %s2291_s29, %s3069_s29   ;;  %s2191_s28 = sphi %s2289_s28, %s3068_s28   ;;  %s2187_s27 = sphi %s2287_s27, %s3067_s27  }
  0x13   : > { %3029 = sst [smem:[#allocation14_spill]] %s2211_s11  ;;  %s1652_s17 = sadd.s32 4294967294, %s2227_s15  }
  0x14   : > { %3030 = sst [smem:[#allocation15_spill]] %s2215_s12  ;;  %p61_p0 = scmp.ne.s32.totalorder %s2203_s9, %s2199_s30 }
  0x15   : > { %p3020_p1 = scmp.eq.s32.totalorder %s2341_s16, 0  ;;  %p87_p2 = scmp.ne.s32.totalorder %s2191_s28, %s2187_s27 }
  0x16   : > { %p245_p5 = scmp.eq.s32.totalorder %s1652_s17, 3  ;;  %p1653_p7 = scmp.ge.s32.totalorder %s2227_s15, 1 }
  0x17   : > { %p2351_p4 = por %p3020_p1, %p61_p0  ;;  %p2357_p6 = por %p87_p2, %p3020_p1 }
  0x18   : > { %p2362_p8 = por %p245_p5, %p61_p0  ;;  %p252_p9 = scmp.lt.s32.totalorder %s2227_s15, 5 }
  0x19   : > { %s3032_s19 = scalar_select %p2357_p6, 1, 0 }
  0x1a   : > { %s3033_s20 = scalar_select %p2362_p8, 1, 0 }
  0x1b   : > { %p2367_p10 = pnand %p1653_p7, %p252_p9  ;;  %s2229_s22 = smov [#allocation7]  }
  0x1c   : > { %3034 = sst [smem:[#allocation16_spill]] %s3033_s20  ;;  %s276_s23 = sshll.u32 %s2229_s22, 4  ;;  %s277_s23 = int_to_ptr.vmem [resolvable:$true] %s276_s23 }
  0x1d   : > { %p1798_p11 = pneg %p2367_p10  ;;  %s2028_s24 = scalar_lea.vmem %s277_s23, 512 }
  0x1e   : > { %p2029_p2 = scmp.ne.s32.totalorder %s277_s23, %s2028_s24  ;;  %p2036_p3 = scmp.lt.s32.totalorder %s277_s23, %s277_s23 }
  0x1f   : > { %p1799_p12 = pnand %p1798_p11, %p3020_p1  ;;  %p2037_p8 = scmp.lt.s32.totalorder %s2028_s24, %s2028_s24 }
  0x21   : > { %p2019_p13 = pneg %p1799_p12  ;;  %p2038_p6 = por %p2037_p8, %p2036_p3 }
  0x23   : > { %p2031_p0 = pnand %p2029_p2, %p2019_p13 }
  0x25   : > { %p2032_p5 = pneg %p2031_p0 }
  0x27   : > { %p2039_p7 = pnand %p2038_p6, %p2032_p5 }
  0x29   : > { %2042 = shalt.err (!%p2039_p7)
}
  0x2a   : > { %s3010_s25 = smov 128   ;;  %s3011_s26 = smov 8  }
  0x2b   : > { %s3036_s6 = sld [smem:[#allocation23_spill]]  ;;  %s36_s22 = sadd.s32 1, %s2219_s13 }
  0x2c   : > { %p37_p3 = scmp.ge.s32.totalorder %s36_s22, 2  ;;  %s39_s24 = sadd.s32 1, %s2223_s14 }
  0x2d   : > { %s48_s20 = sadd.s32 1, %s2207_s10  ;;  %p55_p6 = scmp.ne.s32.totalorder %s2207_s10, %s2203_s9 }
  0x2e   : > { %s3078_s22 = smov (%p37_p3, %s36_s22), 0  ;;  %s3080_s24 = smov (!%p37_p3, %s39_s24), %s2223_s14 }
  0x2f   : > { %3037 = sst [smem:[#allocation17_spill]] %s3078_s22  ;;  %s44_s30 = ssub.s32 %s2219_s13, %s3078_s22 }
  0x30   : > { %p3021_p8 = scmp.eq.s32.totalorder %s2227_s15, 0  ;;  %p41_p9 = scmp.ge.s32.totalorder %s3080_s24, 2 }
  0x31   : > { %1801 = dma.hbm_to_vmem [thread:$0]  (!%p1799_p12), %s3036_s6, 512, %s277_s23, [#allocation6], %s3010_s25, %s3010_s25, %s3011_s26  }
  0x32   : > { %p3038_p11 = scmp.eq.s32.totalorder %s2341_s16, 3  ;;  %p2400_p12 = por %p3021_p8, %p55_p6 }
  0x33   : > { %p1814_p2 = scmp.lt.s32.totalorder %s2227_s15, 4  ;;  %s3082_s24 = smov (%p41_p9, %s3080_s24), 0 }
  0x34   : > { %p2394_p13 = por %p3038_p11, %p55_p6  ;;  %3042 = sst [smem:[#allocation19_spill]] %s3082_s24 }
  0x35   : > { %s293_s17 = sand.u32 1, %s2207_s10   ;;  %s1657_s25 = sshll.u32 %s2223_s14, 3 }
  0x36   : > { %s3039_s27 = scalar_select %p2394_p13, 1, 0 }
  0x37   : > { %s2411_s26 = ssub.s32 %s2223_s14, %s3082_s24  ;;  %s1656_s22 = sshll.u32 %s293_s17, 5 }
  0x38   : > { %3040 = sst [smem:[#allocation18_spill]] %s3039_s27  ;;  %s45_s6 = sor.u32 %s44_s30, %s2411_s26 }
  0x39   : > { %p72_p0 = scmp.eq.s32.totalorder %s2411_s26, 0  ;;  %p46_p5 = scmp.eq.s32.totalorder %s45_s6, 0 }
  0x3a   : > { %s302_s8 = sadd.s32 %s2219_s13, %s1657_s25  ;;  %s297_s12 = scalar_lea.vmem [#allocation2], %s1656_s22 }
  0x3b   : > { %s2417_s27 = scalar_select %p46_p5, %s2207_s10, %s48_s20  }
  0x3c   : > { %s1658_s11 = sshll.u32 %s302_s8, 7  ;;  %s305_s7 = sshll.u32 %s297_s12, 4  ;;  %s306_s7 = int_to_ptr.vmem [resolvable:$true] %s305_s7 }
  0x3d   : > { %s304_s3 = scalar_lea.hbm %s2998_s0, %s1658_s11  ;;  %p2426_p7 = pnand %p1814_p2, %p2400_p12 }
  0x3e   : > { %s294_s30 = scalar_lea.sflag [#allocation3], %s293_s17  ;;  %s2056_s20 = scalar_lea.vmem %s306_s7, 512 }
  0x3f   : > { %p2045_p3 = pneg %p2426_p7  ;;  %p2057_p6 = scmp.ne.s32.totalorder %s306_s7, %s2056_s20 }
  0x40   : > { %s2232_s8 = smov [#allocation2]  }
  0x41   : > { %p2059_p9 = pnand %p2057_p6, %p2045_p3  ;;  %s2061_s12 = sshll.u32 %s2232_s8, 4  ;;  %s2062_s12 = int_to_ptr.vmem [resolvable:$false] %s2061_s12 }
  0x42   : > { %s2063_s4 = scalar_lea.vmem %s2062_s12, 1024  ;;  %p2064_p5 = scmp.lt.s32.totalorder %s306_s7, %s2062_s12 }
  0x43   : > { %p2060_p11 = pneg %p2059_p9  ;;  %p2065_p1 = scmp.lt.s32.totalorder %s2063_s4, %s2056_s20 }
  0x45   : > { %p2066_p8 = por %p2065_p1, %p2064_p5 }
  0x47   : > { %p2067_p12 = pnand %p2066_p8, %p2060_p11 }
  0x49   : > { %2070 = shalt.err (!%p2067_p12)
}
  0x4a   : > { %s2233_s5 = smov 256   ;;  %s3044_s11 = smov 8  }
  0x4b   : > { %s3045_s25 = smov 128   ;;  %s74_s22 = sadd.s32 1, %s2195_s29 }
  0x4c   : > { %1805 = dma.hbm_to_vmem [thread:$0]  (!%p2426_p7), %s304_s3, 512, %s306_s7, %s294_s30, %s2233_s5, %s3045_s25, %s3044_s11  }
  0x4d   : > { %p81_p1 = scmp.ne.s32.totalorder %s2195_s29, %s2191_s28  ;;  %p3046_p8 = scmp.eq.s32.totalorder %s2227_s15, 0 }
  0x4e   : > { %s2444_s23 = scalar_select %p72_p0, %s2195_s29, %s74_s22  }
  0x4f   : > { %p83_p3 = por %p81_p1, %p3046_p8  ;;  %s317_s24 = sand.u32 1, %s2195_s29  }
  0x50   : > { %s1713_s17 = sshll.u32 %s2223_s14, 10  ;;  %s1659_s20 = sshll.u32 %s317_s24, 6 }
  0x51   : > { %s325_s4 = scalar_lea.hbm %s2999_s1, %s1713_s17  ;;  %p2455_p6 = pnand %p1814_p2, %p83_p3 }
  0x52   : > { %s319_s3 = scalar_lea.vmem [#allocation5], %s1659_s20  ;;  %s3048_s26 = sand.u32 1, %s2227_s15  }
  0x53   : > { %s326_s7 = sshll.u32 %s319_s3, 4  ;;  %s316_s30 = scalar_lea.sflag [#allocation6], %s3048_s26  ;;  %s327_s7 = int_to_ptr.vmem [resolvable:$true] %s326_s7 }
  0x54   : > { %p2073_p0 = pneg %p2455_p6  ;;  %s2084_s11 = scalar_lea.vmem %s327_s7, 1024 }
  0x55   : > { %p2085_p7 = scmp.ne.s32.totalorder %s327_s7, %s2084_s11  ;;  %s2234_s25 = smov [#allocation5]  }
  0x56   : > { %s2089_s22 = sshll.u32 %s2234_s25, 4  ;;  %s2090_s22 = int_to_ptr.vmem [resolvable:$false] %s2089_s22 }
  0x57   : > { %p2087_p9 = pnand %p2085_p7, %p2073_p0  ;;  %s2091_s24 = scalar_lea.vmem %s2090_s22, 2048 }
  0x58   : > { %p2092_p2 = scmp.lt.s32.totalorder %s327_s7, %s2090_s22  ;;  %p2093_p5 = scmp.lt.s32.totalorder %s2091_s24, %s2084_s11 }
  0x59   : > { %p2088_p11 = pneg %p2087_p9 }
  0x5a   : > { %p2094_p12 = por %p2093_p5, %p2092_p2 }
  0x5c   : > { %p2095_p1 = pnand %p2094_p12, %p2088_p11 }
  0x5e   : > { %2098 = shalt.err (!%p2095_p1)
}
  0x5f   : > { %s2235_s17 = smov 16   ;;  %338 = sbr.rel (%p2367_p10) target bundleno = 1509 (0x5e5), region = 52 }
  0x60   : > { %1808 = dma.hbm_to_vmem [thread:$0]  (!%p2455_p6), %s325_s4, 1024, %s327_s7, %s316_s30, %s2233_s5, %s2233_s5, %s2235_s17  }
  0x61   : > { %s2470_s20 = sand.u32 (!%p2367_p10), 1, %s2203_s9  }
  0x62   : > { %s1663_s8 = sshll.u32 (!%p2367_p10), %s2470_s20, 5  ;;  %s341_s12 = scalar_lea.sflag (!%p2367_p10), [#allocation3], %s2470_s20 }
  0x63   : > { %s2476_s3 = scalar_lea.vmem (!%p2367_p10), [#allocation2], %s1663_s8 }
  0x64   : > { %2170 = dma.done.wait (%p2351_p4), %s341_s12, 512  }
  0x65   : > { %2172 = vsyncadd (%p2351_p4), %s341_s12, 4294966784  ;;  %s349_s21 = sand.u32 1, %s2341_s16   ;;  %s351_s6 = sand.u32 1, %s2191_s28  }
  0x66   : > { %s1664_s5 = sshll.u32 %s351_s6, 6  ;;  %s350_s4 = scalar_lea.sflag [#allocation6], %s349_s21 }
  0x67   : > { %s2484_s7 = scalar_lea.vmem [#allocation5], %s1664_s5  ;;  %p3049_p10 = scmp.ne.s32.totalorder %s3032_s19, 0 }
  0x69   : > { %2174 = dma.done.wait (%p3049_p10), %s350_s4, 1024  }
  0x6a   : > { %2176 = vsyncadd (%p3049_p10), %s350_s4, 4294966272  ;;  %p3050_p8 = scmp.eq.s32.totalorder %s2341_s16, 0 }
  0x6c   : > { %2178 = dma.done.wait (%p3050_p8), [#allocation6], 512   ;;  %p3051_p3 = pmov %p3050_p8 }
  0x6d   : > { %v395_v0 = vld [vmem:[%s2476_s3] sm:$0xff]  ;;  %v442_v1 = vld [vmem:[%s3000_s2 + $0x18] sm:$0xff]  ;;  %v441_v2 = vld [vmem:[%s3000_s2 + $0x10] sm:$0xff]  ;;  %vm443_vm0 = vcmask 261120   ;;  %v2236_v32 = vmov 0.0   ;;  %s3052_s12 = sld [smem:[#allocation20_spill]]  ;;  %v712_v50 = vlaneseq }
  0x6e   : > { %2180 = vsyncadd (%p3051_p3), [#allocation6], 4294966784  ;;  %407 = vxpose.xlu0.b32.start [1/4] (short) %v395_v0, 128  ;;  %v396_v3 = vld [vmem:[%s2476_s3 + $0x8] sm:$0xff]  ;;  %1742 = vmatprep.subr.mxu0 %v442_v1  ;;  %v439_v5 = vld [vmem:[%s3000_s2] sm:$0xff]  ;;  %s3053_s5 = sld [smem:[#allocation21_spill]]  ;;  %s394_s6 = scalar_lea.vmem [#allocation8], %s1663_s8 }
  0x6f   : > { %1743 = vmatpush3.msra.mxu0 %v442_v1  ;;  %v440_v4 = vld [vmem:[%s3000_s2 + $0x8] sm:$0xff]  ;;  %v397_v6 = vld [vmem:[%s2476_s3 + $0x10] sm:$0xff]  ;;  %v398_v7 = vld [vmem:[%s2476_s3 + $0x18] sm:$0xff]  ;;  %832 = vmatprep.mubr.f32.mxu1 %v2236_v32  ;;  %v713_v51 = vshrl.u32 %v712_v50, 7  ;;  %s3054_s25 = sld [smem:[#allocation22_spill]]  ;;  %s1531_s4 = sshll.u32 %s394_s6, 4  ;;  %s2929_s4 = int_to_ptr.vmem [resolvable:$true] %s1531_s4 }
  0x70   : > { %1744 = vmatprep.subr.mxu0 %v441_v2  ;;  %v406_v8 = vld [vmem:[%s2484_s7 + $0x38] sm:$0xff]  ;;  %v405_v9 = vld [vmem:[%s2484_s7 + $0x30] sm:$0xff]  ;;  %v404_v10 = vld [vmem:[%s2484_s7 + $0x28] sm:$0xff]  ;;  %s3055_s18 = sld [smem:[#allocation24_spill]]  ;;  %s1517_s22 = scalar_lea.sflag [#allocation4], %s2470_s20 }
  0x71   : > { %1745 = vmatpush3.msra.mxu0 %v441_v2  ;;  %792 = vmatprep.subr.mxu1 %v406_v8  ;;  %v403_v11 = vld [vmem:[%s2484_s7 + $0x20] sm:$0xff]  ;;  %v402_v12 = vld [vmem:[%s2484_s7 + $0x18] sm:$0xff]  ;;  %v401_v13 = vld [vmem:[%s2484_s7 + $0x10] sm:$0xff]  ;;  %v714_v53 = vsub.s32 0, %v713_v51  ;;  %s3056_s24 = sld [smem:[#allocation15_spill]] }
  0x72   : > { %408 = vxpose.xlu0.b32.cont [2/4] (short) %v396_v3, 128  ;;  %1746 = vmatprep.subr.mxu0 %v440_v4  ;;  %v400_v14 = vld [vmem:[%s2484_s7 + $0x8] sm:$0xff]  ;;  %v399_v31 = vld [vmem:[%s2484_s7] sm:$0xff]  ;;  %s3057_s17 = sld [smem:[#allocation14_spill]] }
  0x73   : > { %1747 = vmatpush3.msra.mxu0 %v440_v4  ;;  %793 = vmatpush1.msra.mxu1 %v405_v9  ;;  %v637_v33 = vld [vmem:[%s3052_s12] sm:$0x1]  ;;  %s3059_s11 = sld [smem:[#allocation25_spill]] }
  0x74   : > { %1748 = vmatprep.subr.mxu0 %v439_v5  ;;  %794 = vmatprep.subr.mxu1 %v404_v10 }
  0x75   : > { %1749 = vmatpush3.msra.mxu0 %v439_v5  ;;  %795 = vmatpush1.msra.mxu1 %v403_v11 }
  0x76   : > { %409 = vxpose.xlu0.b32.cont [3/4] (short) %v397_v6, 128  ;;  %665 = vmatprep.subr.mxu0 %v406_v8 }
  0x77   : > { %796 = vmatprep.subr.mxu1 %v402_v12  ;;  %s1709_s12 = sshll.u32 %s3056_s24, 3  ;;  %s2099_s24 = scalar_lea.vmem %s2929_s4, 512 }
  0x78   : > { %797 = vmatpush1.msra.mxu1 %v401_v13  ;;  %s1528_s21 = sadd.s32 %s3057_s17, %s1709_s12  ;;  %p2100_p4 = scmp.ne.s32.totalorder %s2929_s4, %s2099_s24 }
  0x79   : > { %798 = vmatprep.subr.mxu1 %v400_v14  ;;  %s1710_s26 = sshll.u32 %s1528_s21, 7  ;;  %s3060_s16 = smov %s3059_s11 }
  0x7a   : > { %410 = vxpose.xlu0.b32.end [4/4] (short) %v398_v7, 128  ;;  %799 = vmatpush1.msra.mxu1 %v399_v31  ;;  %s2935_s19 = scalar_lea.hbm %s3059_s11, %s1710_s26  ;;  %p2101_p6 = pnand %p2100_p4, %p2394_p13 }
  0x7b   : > { %s2238_s17 = smov [#allocation8]  }
  0x7c   : > { %p2102_p0 = pneg %p2101_p6  ;;  %s2103_s12 = sshll.u32 %s2238_s17, 4  ;;  %s2104_s12 = int_to_ptr.vmem [resolvable:$false] %s2103_s12 }
  0x7d   : > { %s2105_s21 = scalar_lea.vmem %s2104_s12, 1024  ;;  %p2106_p7 = scmp.lt.s32.totalorder %s2929_s4, %s2104_s12 }
  0x7e   : > { %p2107_p9 = scmp.lt.s32.totalorder %s2105_s21, %s2099_s24 }
  0x80   : > { %p2108_p11 = por %p2107_p9, %p2106_p7 }
  0x82   : > { %p2109_p2 = pnand %p2108_p11, %p2102_p0 }
  0xea   : > { %v423_v15 = vpop.trf.xlu0 }
  0xeb   : > { %1750 = vmatprep.mubr.msk.f32.mxu0 %vm443_vm0, %v423_v15 }
  0xee   : > { %v424_v16 = vpop.trf.xlu0 }
  0xef   : > { %1751 = vmatmul.mubr.msk.f32.vlgmr.msra.gmra.mxu0 %vm443_vm0, %v424_v16 }
  0xf0   : > { %666 = vmatpush1.msra.mxu0 %v405_v9 }
  0xf1   : > { %667 = vmatprep.subr.mxu0 %v404_v10 }
  0xf2   : > { %v425_v17 = vpop.trf.xlu0  ;;  %668 = vmatpush1.msra.mxu0 %v403_v11 }
  0xf3   : > { %1753 = vmatprep.mubr.msk.f32.mxu0 %vm443_vm0, %v425_v17  ;;  %669 = vmatprep.subr.mxu0 %v402_v12 }
  0xf4   : > { %670 = vmatpush1.msra.mxu0 %v401_v13 }
  0xf5   : > { %671 = vmatprep.subr.mxu0 %v400_v14 }
  0xf6   : > { %v426_v18 = vpop.trf.xlu0  ;;  %672 = vmatpush1.msra.mxu0 %v399_v31 }
  0xf7   : > { %1754 = vmatmul.mubr.msk.f32.gmra.mxu0 %vm443_vm0, %v426_v18  ;;  %1233 = vmatprep.subr.mxu0 %v406_v8 }
  0xfa   : > { %v427_v19 = vpop.trf.xlu0 }
  0xfb   : > { %1756 = vmatprep.mubr.msk.f32.mxu0 %vm443_vm0, %v427_v19 }
  0xfe   : > { %v428_v20 = vpop.trf.xlu0 }
  0xff   : > { %1757 = vmatmul.mubr.msk.f32.gmra.mxu0 %vm443_vm0, %v428_v20 }
 0x102   : > { %v429_v21 = vpop.trf.xlu0 }
 0x103   : > { %1759 = vmatprep.mubr.msk.f32.mxu0 %vm443_vm0, %v429_v21 }
 0x106   : > { %v430_v22 = vpop.trf.xlu0 }
 0x107   : > { %1760 = vmatmul.mubr.msk.f32.gmra.mxu0 %vm443_vm0, %v430_v22 }
 0x10a   : > { %v431_v23 = vpop.trf.xlu0 }
 0x10b   : > { %1762 = vmatprep.mubr.msk.f32.mxu0 %vm443_vm0, %v431_v23 }
 0x10e   : > { %v432_v24 = vpop.trf.xlu0 }
 0x10f   : > { %1763 = vmatmul.mubr.msk.f32.gmra.mxu0 %vm443_vm0, %v432_v24 }
 0x112   : > { %v433_v25 = vpop.trf.xlu0 }
 0x113   : > { %1765 = vmatprep.mubr.msk.f32.mxu0 %vm443_vm0, %v433_v25 }
 0x116   : > { %v434_v26 = vpop.trf.xlu0 }
 0x117   : > { %1766 = vmatmul.mubr.msk.f32.gmra.mxu0 %vm443_vm0, %v434_v26 }
 0x11a   : > { %v435_v27 = vpop.trf.xlu0 }
 0x11b   : > { %1768 = vmatprep.mubr.msk.f32.mxu0 %vm443_vm0, %v435_v27 }
 0x11e   : > { %v436_v28 = vpop.trf.xlu0 }
 0x11f   : > { %1769 = vmatmul.mubr.msk.f32.gmra.mxu0 %vm443_vm0, %v436_v28 }
 0x122   : > { %v437_v29 = vpop.trf.xlu0 }
 0x123   : > { %1771 = vmatprep.mubr.msk.f32.mxu0 %vm443_vm0, %v437_v29 }
 0x126   : > { %v438_v30 = vpop.trf.xlu0 }
 0x127   : > { %1772 = vmatmul.mubr.msk.f32.gmra.mxu0 %vm443_vm0, %v438_v30 }
 0x128   : > { %705 = vmatprep.mubr.f32.mxu0 %v2236_v32 }
 0x12b   : > { %1683 = vmatmul.mubr.msk.f32.vlgmr.msra.gmra.mxu0 %vm443_vm0, %v637_v33 }
 0x12c   : > { %1234 = vmatpush1.msra.mxu0 %v405_v9  ;;  %1273 = vmatprep.mubr.f32.mxu0 %v2236_v32 }
 0x12d   : > { %1235 = vmatprep.subr.mxu0 %v404_v10 }
 0x12e   : > { %1236 = vmatpush1.msra.mxu0 %v403_v11 }
 0x12f   : > { %1237 = vmatprep.subr.mxu0 %v402_v12 }
 0x130   : > { %1238 = vmatpush1.msra.mxu0 %v401_v13 }
 0x131   : > { %1239 = vmatprep.subr.mxu0 %v400_v14 }
 0x132   : > { %1240 = vmatpush1.msra.mxu0 %v399_v31 }
 0x1af   : > { %v1752_v34 = vpop.f32.mrf.mxu0 }
 0x1b1   : > { %v558_v35 = vpop.f32.mrf.mxu0 }
 0x1b2   : > { %1684 = vmatmul.mubr.msk.f32.vlgmr.msra.gmra.mxu1 %vm443_vm0, %v558_v35 }
 0x1b3   : > { %838 = vmatprep.mubr.f32.mxu1 %v2236_v32 }
 0x1b6   : > { %1685 = vmatmul.mubr.msk.f32.gmra.mxu1 %vm443_vm0, %v1752_v34 }
 0x1b7   : > { %v1755_v36 = vpop.f32.mrf.mxu0  ;;  %844 = vmatprep.mubr.f32.mxu1 %v2236_v32 }
 0x1b9   : > { %v568_v37 = vpop.f32.mrf.mxu0 }
 0x1ba   : > { %1686 = vmatmul.mubr.msk.f32.gmra.mxu1 %vm443_vm0, %v568_v37 }
 0x1bb   : > { %850 = vmatprep.mubr.f32.mxu1 %v2236_v32 }
 0x1be   : > { %1687 = vmatmul.mubr.msk.f32.gmra.mxu1 %vm443_vm0, %v1755_v36 }
 0x1bf   : > { %v1758_v38 = vpop.f32.mrf.mxu0  ;;  %856 = vmatprep.mubr.f32.mxu1 %v2236_v32 }
 0x1c1   : > { %v578_v39 = vpop.f32.mrf.mxu0 }
 0x1c2   : > { %1688 = vmatmul.mubr.msk.f32.gmra.mxu1 %vm443_vm0, %v578_v39 }
 0x1c3   : > { %862 = vmatprep.mubr.f32.mxu1 %v2236_v32 }
 0x1c6   : > { %1689 = vmatmul.mubr.msk.f32.gmra.mxu1 %vm443_vm0, %v1758_v38 }
 0x1c7   : > { %v1761_v40 = vpop.f32.mrf.mxu0  ;;  %868 = vmatprep.mubr.f32.mxu1 %v2236_v32 }
 0x1c9   : > { %v588_v41 = vpop.f32.mrf.mxu0 }
 0x1ca   : > { %1690 = vmatmul.mubr.msk.f32.gmra.mxu1 %vm443_vm0, %v588_v41 }
 0x1cb   : > { %874 = vmatprep.mubr.f32.mxu1 %v2236_v32 }
 0x1ce   : > { %1691 = vmatmul.mubr.msk.f32.gmra.mxu1 %vm443_vm0, %v1761_v40 }
 0x1cf   : > { %v1764_v42 = vpop.f32.mrf.mxu0  ;;  %880 = vmatprep.mubr.f32.mxu1 %v2236_v32 }
 0x1d1   : > { %v598_v43 = vpop.f32.mrf.mxu0 }
 0x1d2   : > { %1692 = vmatmul.mubr.msk.f32.gmra.mxu1 %vm443_vm0, %v598_v43 }
 0x1d3   : > { %886 = vmatprep.mubr.f32.mxu1 %v2236_v32 }
 0x1d6   : > { %1693 = vmatmul.mubr.msk.f32.gmra.mxu1 %vm443_vm0, %v1764_v42 }
 0x1d7   : > { %v1767_v44 = vpop.f32.mrf.mxu0  ;;  %892 = vmatprep.mubr.f32.mxu1 %v2236_v32 }
 0x1d9   : > { %v608_v45 = vpop.f32.mrf.mxu0 }
 0x1da   : > { %1694 = vmatmul.mubr.msk.f32.gmra.mxu1 %vm443_vm0, %v608_v45 }
 0x1db   : > { %898 = vmatprep.mubr.f32.mxu1 %v2236_v32 }
 0x1de   : > { %1695 = vmatmul.mubr.msk.f32.gmra.mxu1 %vm443_vm0, %v1767_v44 }
 0x1df   : > { %v1770_v46 = vpop.f32.mrf.mxu0  ;;  %904 = vmatprep.mubr.f32.mxu1 %v2236_v32 }
 0x1e1   : > { %v618_v47 = vpop.f32.mrf.mxu0 }
 0x1e2   : > { %1696 = vmatmul.mubr.msk.f32.gmra.mxu1 %vm443_vm0, %v618_v47 }
 0x1e3   : > { %910 = vmatprep.mubr.f32.mxu1 %v2236_v32 }
 0x1e6   : > { %1697 = vmatmul.mubr.msk.f32.gmra.mxu1 %vm443_vm0, %v1770_v46 }
 0x1e7   : > { %v1773_v48 = vpop.f32.mrf.mxu0  ;;  %916 = vmatprep.mubr.f32.mxu1 %v2236_v32 }
 0x1e9   : > { %v628_v49 = vpop.f32.mrf.mxu0 }
 0x1ea   : > { %1698 = vmatmul.mubr.msk.f32.gmra.mxu1 %vm443_vm0, %v628_v49 }
 0x1eb   : > { %922 = vmatprep.mubr.f32.mxu1 %v2236_v32  ;;  %v707_v52 = vpop.f32.mrf.mxu0 }
 0x1ec   : > { %v2572_v55 = vrot.slane %v707_v52, %v714_v53 }
 0x1ed   : > { %v709_v54 = vpop.f32.mrf.mxu0 }
 0x1ee   : > { %1699 = vmatmul.mubr.msk.f32.gmra.mxu1 %vm443_vm0, %v1773_v48  ;;  %v2574_v56 = vrot.slane %v709_v54, %v714_v53 }
 0x272   : > { %v834_v57 = vpop.f32.mrf.mxu1 }
 0x273   : > { %v2577_v58 = vadd.f32 %v834_v57, %v2572_v55 }
 0x274   : > { %v836_v59 = vpop.f32.mrf.mxu1 }
 0x275   : > { %v2580_v60 = vadd.f32 %v836_v59, %v2574_v56 }
 0x276   : > { %v840_v61 = vpop.f32.mrf.mxu1 }
 0x277   : > { %v2583_v62 = vadd.f32 %v840_v61, %v2572_v55 }
 0x278   : > { %v842_v63 = vpop.f32.mrf.mxu1 }
 0x279   : > { %v2586_v0 = vadd.f32 %v842_v63, %v2574_v56 }
 0x27a   : > { %v846_v1 = vpop.f32.mrf.mxu1 }
 0x27b   : > { %v2589_v2 = vadd.f32 %v846_v1, %v2572_v55 }
 0x27c   : > { %v848_v3 = vpop.f32.mrf.mxu1 }
 0x27d   : > { %v2592_v4 = vadd.f32 %v848_v3, %v2574_v56 }
 0x27e   : > { %v2594_v5 = vpop.f32.mrf.mxu1 }
 0x280   : > { %v2596_v6 = vpop.f32.mrf.mxu1 }
 0x282   : > { %v2598_v7 = vpop.f32.mrf.mxu1 }
 0x284   : > { %v2600_v8 = vpop.f32.mrf.mxu1 }
 0x286   : > { %v864_v9 = vpop.f32.mrf.mxu1 }
 0x288   : > { %v866_v10 = vpop.f32.mrf.mxu1 }
 0x28a   : > { %v870_v11 = vpop.f32.mrf.mxu1 }
 0x28b   : > { %v2678_v3 = vadd.f32 %v870_v11, %v2572_v55  ;;  %v2696_v11 = vadd.f32 %v2598_v7, %v2572_v55  ;;  %v935_v7 = vmax.f32 %v2589_v2, %v2592_v4 }
 0x28c   : > { %v872_v12 = vpop.f32.mrf.mxu1 }
 0x28d   : > { %v2673_v63 = vadd.f32 %v872_v12, %v2574_v56  ;;  %v2690_v12 = vadd.f32 %v2600_v8, %v2574_v56 }
 0x28e   : > { %v876_v13 = vpop.f32.mrf.mxu1 }
 0x28f   : > { %v2670_v61 = vadd.f32 %v876_v13, %v2572_v55  ;;  %v2686_v13 = vadd.f32 %v864_v9, %v2572_v55  ;;  %v941_v9 = vmax.f32 %v2696_v11, %v2690_v12 }
 0x290   : > { %v878_v14 = vpop.f32.mrf.mxu1 }
 0x291   : > { %v2665_v57 = vadd.f32 %v878_v14, %v2574_v56  ;;  %v2681_v14 = vadd.f32 %v866_v10, %v2574_v56  ;;  %v2700_v10 = vadd.f32 %v2596_v6, %v2574_v56  ;;  %v929_v6 = vmax.f32 %v2577_v58, %v2580_v60 }
 0x292   : > { %v882_v15 = vpop.f32.mrf.mxu1 }
 0x293   : > { %v2662_v54 = vadd.f32 %v882_v15, %v2572_v55  ;;  %v950_v1 = vmax.f32 %v2670_v61, %v2665_v57  ;;  %v947_v15 = vmax.f32 %v2678_v3, %v2673_v63 }
 0x294   : > { %v884_v16 = vpop.f32.mrf.mxu1 }
 0x295   : > { %v2657_v52 = vadd.f32 %v884_v16, %v2574_v56  ;;  %v944_v16 = vmax.f32 %v2686_v13, %v2681_v14 }
 0x296   : > { %v888_v17 = vpop.f32.mrf.mxu1 }
 0x297   : > { %v2654_v51 = vadd.f32 %v888_v17, %v2572_v55  ;;  %v953_v59 = vmax.f32 %v2662_v54, %v2657_v52  ;;  %v2706_v17 = vadd.f32 %v2594_v5, %v2572_v55  ;;  %v1170_v5 = vld [vmem:[%s3053_s5 + $0x8] sm:$0xff] }
 0x298   : > { %v890_v18 = vpop.f32.mrf.mxu1 }
 0x299   : > { %v2649_v49 = vadd.f32 %v890_v18, %v2574_v56  ;;  %v938_v8 = vmax.f32 %v2706_v17, %v2700_v10  ;;  %v1171_v18 = vld [vmem:[%s3053_s5 + $0x10] sm:$0xff] }
 0x29a   : > { %v894_v19 = vpop.f32.mrf.mxu1 }
 0x29b   : > { %v2646_v48 = vadd.f32 %v894_v19, %v2572_v55  ;;  %v956_v53 = vmax.f32 %v2654_v51, %v2649_v49  ;;  %v1172_v19 = vld [vmem:[%s3053_s5 + $0x18] sm:$0xff] }
 0x29c   : > { %v896_v20 = vpop.f32.mrf.mxu1 }
 0x29d   : > { %v2641_v46 = vadd.f32 %v896_v20, %v2574_v56  ;;  %v2237_v20 = vmov 0  }
 0x29e   : > { %v900_v21 = vpop.f32.mrf.mxu1  ;;  %1915 = vset.pattern.permute.xlu1 %v2237_v20  ;;  %1916 = vset.pattern.permute.xlu0 %v2237_v20 }
 0x29f   : > { %v2603_v23 = vadd.f32 %v900_v21, %v2572_v55  ;;  %v959_v50 = vmax.f32 %v2646_v48, %v2641_v46 }
 0x2a0   : > { %v902_v22 = vpop.f32.mrf.mxu1 }
 0x2a1   : > { %v2606_v24 = vadd.f32 %v902_v22, %v2574_v56 }
 0x2a2   : > { %v906_v25 = vpop.f32.mrf.mxu1 }
 0x2a3   : > { %v962_v26 = vmax.f32 %v2603_v23, %v2606_v24  ;;  %v2638_v45 = vadd.f32 %v906_v25, %v2572_v55 }
 0x2a4   : > { %v908_v27 = vpop.f32.mrf.mxu1 }
 0x2a5   : > { %963 = vmax.xlane.f32.xlu0 %v962_v26  ;;  %v2633_v43 = vadd.f32 %v908_v27, %v2574_v56 }
 0x2a6   : > { %v912_v28 = vpop.f32.mrf.mxu1 }
 0x2a7   : > { %v2630_v42 = vadd.f32 %v912_v28, %v2572_v55  ;;  %v965_v47 = vmax.f32 %v2638_v45, %v2633_v43 }
 0x2a8   : > { %v914_v29 = vpop.f32.mrf.mxu1 }
 0x2a9   : > { %v2625_v40 = vadd.f32 %v914_v29, %v2574_v56 }
 0x2aa   : > { %v918_v30 = vpop.f32.mrf.mxu1 }
 0x2ab   : > { %v2622_v39 = vadd.f32 %v918_v30, %v2572_v55  ;;  %v968_v44 = vmax.f32 %v2630_v42, %v2625_v40 }
 0x2ac   : > { %v920_v31 = vpop.f32.mrf.mxu1 }
 0x2ad   : > { %v2617_v37 = vadd.f32 %v920_v31, %v2574_v56 }
 0x2ae   : > { %v924_v33 = vpop.f32.mrf.mxu1 }
 0x2af   : > { %v2611_v35 = vadd.f32 %v924_v33, %v2572_v55  ;;  %v971_v41 = vmax.f32 %v2622_v39, %v2617_v37  ;;  %v932_v55 = vmax.f32 %v2583_v62, %v2586_v0 }
 0x2b0   : > { %v926_v34 = vpop.f32.mrf.mxu1 }
 0x2b1   : > { %v2614_v36 = vadd.f32 %v926_v34, %v2574_v56  ;;  %v1169_v56 = vld [vmem:[%s3053_s5] sm:$0xff] }
 0x2b2   : > { %1700 = vmatmul.mubr.msk.f32.vlgmr.msra.gmra.mxu0 %vm443_vm0, %v1169_v56 }
 0x2b3   : > { %v974_v38 = vmax.f32 %v2611_v35, %v2614_v36  ;;  %1279 = vmatprep.mubr.f32.mxu0 %v2236_v32 }
 0x2b5   : > { %975 = vmax.xlane.f32.xlu1 %v974_v38 }
 0x2b6   : > { %1701 = vmatmul.mubr.msk.f32.gmra.mxu0 %vm443_vm0, %v1170_v5 }
 0x2b7   : > { %1285 = vmatprep.mubr.f32.mxu0 %v2236_v32 }
 0x2b9   : > { %972 = vmax.xlane.f32.xlu1 %v971_v41 }
 0x2ba   : > { %1702 = vmatmul.mubr.msk.f32.gmra.mxu0 %vm443_vm0, %v1171_v18 }
 0x2bb   : > { %1291 = vmatprep.mubr.f32.mxu0 %v2236_v32 }
 0x2bd   : > { %969 = vmax.xlane.f32.xlu1 %v968_v44 }
 0x2be   : > { %1703 = vmatmul.mubr.msk.f32.gmra.mxu0 %vm443_vm0, %v1172_v19 }
 0x2c1   : > { %966 = vmax.xlane.f32.xlu1 %v965_v47 }
 0x2c5   : > { %960 = vmax.xlane.f32.xlu1 %v959_v50 }
 0x2c9   : > { %957 = vmax.xlane.f32.xlu1 %v956_v53 }
 0x2cd   : > { %954 = vmax.xlane.f32.xlu1 %v953_v59 }
 0x2d1   : > { %951 = vmax.xlane.f32.xlu1 %v950_v1 }
 0x2d5   : > { %948 = vmax.xlane.f32.xlu1 %v947_v15 }
 0x2d9   : > { %945 = vmax.xlane.f32.xlu1 %v944_v16 }
 0x2dd   : > { %942 = vmax.xlane.f32.xlu1 %v941_v9 }
 0x2e1   : > { %939 = vmax.xlane.f32.xlu1 %v938_v8 }
 0x2e5   : > { %936 = vmax.xlane.f32.xlu1 %v935_v7 }
 0x2e9   : > { %933 = vmax.xlane.f32.xlu1 %v932_v55 }
 0x2ed   : > { %930 = vmax.xlane.f32.xlu1 %v929_v6 }
 0x32e   : > { %v964_v41 = vpop.xlane.xlu0 %963 }
 0x32f   : > { %v999_v47 = vsub.f32 %v2603_v23, %v964_v41  ;;  %v1000_v53 = vsub.f32 %v2606_v24, %v964_v41 }
 0x331   : > { %v1053_v59 = vmul.f32 1.442695, %v999_v47  ;;  %v1055_v15 = vmul.f32 1.442695, %v1000_v53 }
 0x33e   : > { %v976_v21 = vpop.xlane.xlu1 %975 }
 0x33f   : > { %v1007_v22 = vsub.f32 %v2611_v35, %v976_v21  ;;  %v1008_v25 = vsub.f32 %v2614_v36, %v976_v21 }
 0x341   : > { %v1069_v32 = vmul.f32 1.442695, %v1007_v22  ;;  %v1071_v31 = vmul.f32 1.442695, %v1008_v25 }
 0x342   : > { %v973_v26 = vpop.xlane.xlu1 %972 }
 0x343   : > { %v1005_v27 = vsub.f32 %v2622_v39, %v973_v26  ;;  %v1006_v28 = vsub.f32 %v2617_v37, %v973_v26 }
 0x345   : > { %v1065_v29 = vmul.f32 1.442695, %v1005_v27  ;;  %v1067_v30 = vmul.f32 1.442695, %v1006_v28 }
 0x346   : > { %v970_v33 = vpop.xlane.xlu1 %969 }
 0x347   : > { %1917 = vpow2.f32 %v1065_v29  ;;  %v1003_v34 = vsub.f32 %v2630_v42, %v970_v33  ;;  %v1004_v38 = vsub.f32 %v2625_v40, %v970_v33 }
 0x348   : > { %1919 = vpow2.f32 %v1067_v30 }
 0x349   : > { %1921 = vpow2.f32 %v1069_v32  ;;  %v1061_v35 = vmul.f32 1.442695, %v1003_v34  ;;  %v1063_v36 = vmul.f32 1.442695, %v1004_v38 }
 0x34a   : > { %1923 = vpow2.f32 %v1071_v31  ;;  %v967_v44 = vpop.xlane.xlu1 %966 }
 0x34b   : > { %v1001_v39 = vsub.f32 %v2638_v45, %v967_v44  ;;  %v1002_v37 = vsub.f32 %v2633_v43, %v967_v44  ;;  %1925 = vpow2.f32 %v1061_v35 }
 0x34c   : > { %1927 = vpow2.f32 %v1063_v36 }
 0x34d   : > { %v1057_v50 = vmul.f32 1.442695, %v1001_v39  ;;  %v1059_v42 = vmul.f32 1.442695, %v1002_v37 }
 0x34e   : > { %v961_v40 = vpop.xlane.xlu1 %960 }
 0x34f   : > { %1929 = vpow2.f32 %v1057_v50  ;;  %v997_v1 = vsub.f32 %v2646_v48, %v961_v40  ;;  %v998_v16 = vsub.f32 %v2641_v46, %v961_v40 }
 0x350   : > { %1931 = vpow2.f32 %v1059_v42 }
 0x351   : > { %1933 = vpow2.f32 %v1053_v59  ;;  %v1049_v23 = vmul.f32 1.442695, %v997_v1  ;;  %v1051_v7 = vmul.f32 1.442695, %v998_v16 }
 0x352   : > { %v958_v45 = vpop.xlane.xlu1 %957  ;;  %1935 = vpow2.f32 %v1055_v15 }
 0x353   : > { %v995_v24 = vsub.f32 %v2654_v51, %v958_v45  ;;  %v996_v56 = vsub.f32 %v2649_v49, %v958_v45  ;;  %1937 = vpow2.f32 %v1049_v23 }
 0x354   : > { %v2747_v9 = vpop.eup %1917  ;;  %1939 = vpow2.f32 %v1051_v7 }
 0x355   : > { %v2749_v43 = vpop.eup %1919  ;;  %v1045_v5 = vmul.f32 1.442695, %v995_v24  ;;  %v1047_v51 = vmul.f32 1.442695, %v996_v56 }
 0x356   : > { %v2752_v8 = vpop.eup %1921  ;;  %v955_v48 = vpop.xlane.xlu1 %954  ;;  %v1115_v55 = vadd.f32 %v2749_v43, %v2747_v9 }
 0x357   : > { %v2757_v46 = vpop.eup %1923  ;;  %v993_v6 = vsub.f32 %v2662_v54, %v955_v48  ;;  %v994_v19 = vsub.f32 %v2657_v52, %v955_v48  ;;  %1941 = vpow2.f32 %v1045_v5 }
 0x358   : > { %1116 = vadd.xlane.f32.xlu1 %v1115_v55  ;;  %v2760_v18 = vpop.eup %1925  ;;  %v1118_v49 = vadd.f32 %v2757_v46, %v2752_v8  ;;  %1943 = vpow2.f32 %v1047_v51 }
 0x359   : > { %v2765_v21 = vpop.eup %1927  ;;  %v1041_v22 = vmul.f32 1.442695, %v993_v6  ;;  %v1043_v54 = vmul.f32 1.442695, %v994_v19 }
 0x35a   : > { %v952_v20 = vpop.xlane.xlu1 %951  ;;  %v1112_v52 = vadd.f32 %v2765_v21, %v2760_v18 }
 0x35b   : > { %v991_v25 = vsub.f32 %v2670_v61, %v952_v20  ;;  %v992_v27 = vsub.f32 %v2665_v57, %v952_v20  ;;  %1945 = vpow2.f32 %v1041_v22 }
 0x35c   : > { %1119 = vadd.xlane.f32.xlu1 %v1118_v49  ;;  %v2768_v26 = vpop.eup %1929  ;;  %1947 = vpow2.f32 %v1043_v54 }
 0x35d   : > { %v2773_v32 = vpop.eup %1931  ;;  %v1037_v29 = vmul.f32 1.442695, %v991_v25  ;;  %v1039_v61 = vmul.f32 1.442695, %v992_v27 }
 0x35e   : > { %v949_v28 = vpop.xlane.xlu1 %948  ;;  %v2776_v31 = vpop.eup %1933  ;;  %v1109_v57 = vadd.f32 %v2773_v32, %v2768_v26 }
 0x35f   : > { %v989_v30 = vsub.f32 %v2678_v3, %v949_v28  ;;  %v990_v33 = vsub.f32 %v2673_v63, %v949_v28  ;;  %v2781_v38 = vpop.eup %1935  ;;  %1949 = vpow2.f32 %v1037_v29 }
 0x360   : > { %1113 = vadd.xlane.f32.xlu1 %v1112_v52  ;;  %v2784_v36 = vpop.eup %1937  ;;  %1951 = vpow2.f32 %v1039_v61  ;;  %v1106_v63 = vadd.f32 %v2781_v38, %v2776_v31 }
 0x361   : > { %v1033_v35 = vmul.f32 1.442695, %v989_v30  ;;  %v1035_v3 = vmul.f32 1.442695, %v990_v33  ;;  %v2789_v37 = vpop.eup %1939 }
 0x362   : > { %v946_v34 = vpop.xlane.xlu1 %945 }
 0x363   : > { %v987_v41 = vsub.f32 %v2686_v13, %v946_v34  ;;  %v988_v44 = vsub.f32 %v2681_v14, %v946_v34  ;;  %1953 = vpow2.f32 %v1033_v35  ;;  %v1103_v14 = vadd.f32 %v2789_v37, %v2784_v36 }
 0x364   : > { %1110 = vadd.xlane.f32.xlu1 %v1109_v57  ;;  %v2792_v53 = vpop.eup %1941  ;;  %1955 = vpow2.f32 %v1035_v3 }
 0x365   : > { %v1029_v47 = vmul.f32 1.442695, %v987_v41  ;;  %v1031_v13 = vmul.f32 1.442695, %v988_v44  ;;  %v2797_v59 = vpop.eup %1943 }
 0x366   : > { %v943_v39 = vpop.xlane.xlu1 %942 }
 0x367   : > { %v985_v50 = vsub.f32 %v2696_v11, %v943_v39  ;;  %v986_v42 = vsub.f32 %v2690_v12, %v943_v39  ;;  %1957 = vpow2.f32 %v1029_v47  ;;  %v1100_v12 = vadd.f32 %v2797_v59, %v2792_v53 }
 0x368   : > { %1107 = vadd.xlane.f32.xlu1 %v1106_v63  ;;  %v2800_v16 = vpop.eup %1945  ;;  %1959 = vpow2.f32 %v1031_v13 }
 0x369   : > { %v1025_v1 = vmul.f32 1.442695, %v985_v50  ;;  %v1027_v11 = vmul.f32 1.442695, %v986_v42  ;;  %v2805_v24 = vpop.eup %1947 }
 0x36a   : > { %v940_v40 = vpop.xlane.xlu1 %939  ;;  %v1097_v51 = vadd.f32 %v2805_v24, %v2800_v16 }
 0x36b   : > { %v983_v15 = vsub.f32 %v2706_v17, %v940_v40  ;;  %v984_v45 = vsub.f32 %v2700_v10, %v940_v40  ;;  %1961 = vpow2.f32 %v1025_v1  ;;  %v1175_v1 = vld [vmem:[%s3054_s25 + $0x10] sm:$0xff] }
 0x36c   : > { %1104 = vadd.xlane.f32.xlu1 %v1103_v14  ;;  %v2809_v5 = vpop.eup %1949  ;;  %1963 = vpow2.f32 %v1027_v11  ;;  %v1173_v14 = vld [vmem:[%s3054_s25] sm:$0xff]  ;;  %v1176_v11 = vld [vmem:[%s3054_s25 + $0x18] sm:$0xff] }
 0x36d   : > { %v1021_v48 = vmul.f32 1.442695, %v983_v15  ;;  %v1023_v6 = vmul.f32 1.442695, %v984_v45  ;;  %v2813_v19 = vpop.eup %1951  ;;  %v1174_v15 = vld [vmem:[%s3054_s25 + $0x8] sm:$0xff]  ;;  %v1387_v45 = vld [vmem:[%s3055_s18] sm:$0xff] }
 0x36e   : > { %v937_v23 = vpop.xlane.xlu1 %936  ;;  %v1094_v54 = vadd.f32 %v2813_v19, %v2809_v5 }
 0x36f   : > { %v981_v7 = vsub.f32 %v2589_v2, %v937_v23  ;;  %v982_v56 = vsub.f32 %v2592_v4, %v937_v23  ;;  %v1388_v23 = vld [vmem:[%s3055_s18 + $0x8] sm:$0xff] }
 0x370   : > { %1101 = vadd.xlane.f32.xlu1 %v1100_v12  ;;  %v2817_v49 = vpop.eup %1953  ;;  %v1389_v12 = vld [vmem:[%s3055_s18 + $0x10] sm:$0xff] }
 0x371   : > { %v1017_v17 = vmul.f32 1.442695, %v981_v7  ;;  %v1019_v55 = vmul.f32 1.442695, %v982_v56  ;;  %v2821_v27 = vpop.eup %1955  ;;  %v1390_v7 = vld [vmem:[%s3055_s18 + $0x18] sm:$0xff] }
 0x372   : > { %v934_v10 = vpop.xlane.xlu1 %933  ;;  %v1091_v30 = vadd.f32 %v2821_v27, %v2817_v49 }
 0x373   : > { %1965 = vpow2.f32 %v1017_v17  ;;  %v979_v2 = vsub.f32 %v2583_v62, %v934_v10  ;;  %v980_v4 = vsub.f32 %v2586_v0, %v934_v10 }
 0x374   : > { %1967 = vpow2.f32 %v1019_v55  ;;  %1098 = vadd.xlane.f32.xlu1 %v1097_v51  ;;  %v2825_v29 = vpop.eup %1957 }
 0x375   : > { %1969 = vpow2.f32 %v1021_v48  ;;  %v1013_v20 = vmul.f32 1.442695, %v979_v2  ;;  %v1015_v22 = vmul.f32 1.442695, %v980_v4  ;;  %v2829_v61 = vpop.eup %1959 }
 0x376   : > { %1971 = vpow2.f32 %v1023_v6  ;;  %v931_v25 = vpop.xlane.xlu1 %930 }
 0x377   : > { %v977_v28 = vsub.f32 %v2577_v58, %v931_v25  ;;  %v978_v62 = vsub.f32 %v2580_v60, %v931_v25  ;;  %1973 = vpow2.f32 %v1013_v20  ;;  %v1088_v58 = vadd.f32 %v2829_v61, %v2825_v29 }
 0x378   : > { %1095 = vadd.xlane.f32.xlu1 %v1094_v54  ;;  %1975 = vpow2.f32 %v1015_v22  ;;  %v2831_v33 = vpop.eup %1961 }
 0x379   : > { %v1009_v0 = vmul.f32 1.442695, %v977_v28  ;;  %v1011_v52 = vmul.f32 1.442695, %v978_v62  ;;  %v2835_v60 = vpop.eup %1963 }
 0x37a   : > { %v1085_v3 = vadd.f32 %v2835_v60, %v2831_v33 }
 0x37b   : > { %1977 = vpow2.f32 %v1009_v0 }
 0x37c   : > { %1979 = vpow2.f32 %v1011_v52  ;;  %1092 = vadd.xlane.f32.xlu1 %v1091_v30 }
 0x380   : > { %v2837_v34 = vpop.eup %1965  ;;  %1089 = vadd.xlane.f32.xlu1 %v1088_v58 }
 0x381   : > { %v2839_v57 = vpop.eup %1967 }
 0x382   : > { %v2841_v35 = vpop.eup %1969  ;;  %v1079_v41 = vadd.f32 %v2839_v57, %v2837_v34 }
 0x383   : > { %v2847_v44 = vpop.eup %1971 }
 0x384   : > { %1080 = vadd.xlane.f32.xlu0 %v1079_v41  ;;  %1086 = vadd.xlane.f32.xlu1 %v1085_v3  ;;  %v2849_v39 = vpop.eup %1973  ;;  %v1082_v63 = vadd.f32 %v2847_v44, %v2841_v35 }
 0x385   : > { %v2853_v47 = vpop.eup %1975 }
 0x386   : > { %v1076_v42 = vadd.f32 %v2853_v47, %v2849_v39 }
 0x388   : > { %v2855_v50 = vpop.eup %1977  ;;  %1083 = vadd.xlane.f32.xlu1 %v1082_v63 }
 0x389   : > { %v2857_v13 = vpop.eup %1979 }
 0x38a   : > { %v1073_v40 = vadd.f32 %v2857_v13, %v2855_v50 }
 0x38c   : > { %1077 = vadd.xlane.f32.xlu1 %v1076_v42  ;;  %1074 = vadd.xlane.f32.xlu0 %v1073_v40 }
 0x39d   : > { %1179 = vperm.xlu1 %1915, %v1173_v14  }
 0x3a1   : > { %1189 = vperm.xlu1 %1915, %v1175_v1  }
 0x3a2   : > { %1184 = vperm.xlu0 %1916, %v1174_v15  }
 0x3a5   : > { %1194 = vperm.xlu1 %1915, %v1176_v11  }
 0x3a9   : > { %1393 = vperm.xlu1 %1915, %v1387_v45  }
 0x3ad   : > { %1398 = vperm.xlu1 %1915, %v1388_v23  }
 0x3b1   : > { %1403 = vperm.xlu1 %1915, %v1389_v12  }
 0x3b5   : > { %1408 = vperm.xlu1 %1915, %v1390_v7  }
 0x3e1   : > { %v1117_v56 = vpop.xlane.xlu1 %1116 }
 0x3e2   : > { %1981 = vrcp.f32 %v1117_v56 }
 0x3e5   : > { %v1120_v48 = vpop.xlane.xlu1 %1119 }
 0x3e6   : > { %1983 = vrcp.f32 %v1120_v48 }
 0x3e9   : > { %v1114_v17 = vpop.xlane.xlu1 %1113 }
 0x3ea   : > { %1985 = vrcp.f32 %v1114_v17 }
 0x3ed   : > { %v1111_v55 = vpop.xlane.xlu1 %1110 }
 0x3ee   : > { %1987 = vrcp.f32 %v1111_v55 }
 0x3ef   : > { %v1982_v10 = vpop.eup %1981 }
 0x3f0   : > { %v1166_v22 = vmul.f32 %v1982_v10, %v2749_v43  ;;  %v1165_v28 = vmul.f32 %v1982_v10, %v2747_v9 }
 0x3f1   : > { %v1108_v6 = vpop.xlane.xlu1 %1107 }
 0x3f2   : > { %1989 = vrcp.f32 %v1108_v6 }
 0x3f3   : > { %v1984_v51 = vpop.eup %1983 }
 0x3f4   : > { %v1168_v2 = vmul.f32 %v1984_v51, %v2757_v46  ;;  %v1167_v4 = vmul.f32 %v1984_v51, %v2752_v8 }
 0x3f5   : > { %v1105_v20 = vpop.xlane.xlu1 %1104 }
 0x3f6   : > { %1991 = vrcp.f32 %v1105_v20  ;;  %1298 = vmatprep.subr.mxu1 %v1168_v2 }
 0x3f7   : > { %v1986_v25 = vpop.eup %1985  ;;  %1299 = vmatpush1.xpose.msra.mxu1 %v1167_v4 }
 0x3f8   : > { %1300 = vmatprep.subr.mxu1 %v1166_v22  ;;  %v1164_v62 = vmul.f32 %v1986_v25, %v2765_v21  ;;  %v1163_v8 = vmul.f32 %v1986_v25, %v2760_v18 }
 0x3f9   : > { %v1102_v54 = vpop.xlane.xlu1 %1101 }
 0x3fa   : > { %1993 = vrcp.f32 %v1102_v54 }
 0x3fb   : > { %v1988_v0 = vpop.eup %1987  ;;  %1301 = vmatpush1.xpose.msra.mxu1 %v1165_v28 }
 0x3fc   : > { %1302 = vmatprep.subr.mxu1 %v1164_v62  ;;  %v1162_v52 = vmul.f32 %v1988_v0, %v2773_v32  ;;  %v1161_v58 = vmul.f32 %v1988_v0, %v2768_v26 }
 0x3fd   : > { %v1099_v46 = vpop.xlane.xlu1 %1098 }
 0x3fe   : > { %1995 = vrcp.f32 %v1099_v46 }
 0x3ff   : > { %v1990_v30 = vpop.eup %1989  ;;  %1303 = vmatpush1.xpose.msra.mxu1 %v1163_v8 }
 0x400   : > { %1304 = vmatprep.subr.mxu1 %v1162_v52  ;;  %v1160_v9 = vmul.f32 %v1990_v30, %v2781_v38  ;;  %v1159_v3 = vmul.f32 %v1990_v30, %v2776_v31 }
 0x401   : > { %v1096_v43 = vpop.xlane.xlu1 %1095 }
 0x402   : > { %1997 = vrcp.f32 %v1096_v43 }
 0x403   : > { %v1992_v41 = vpop.eup %1991  ;;  %1305 = vmatpush1.xpose.msra.mxu1 %v1161_v58 }
 0x404   : > { %1306 = vmatprep.subr.mxu1 %v1160_v9  ;;  %v1158_v18 = vmul.f32 %v1992_v41, %v2789_v37  ;;  %v1157_v42 = vmul.f32 %v1992_v41, %v2784_v36 }
 0x405   : > { %v1093_v21 = vpop.xlane.xlu1 %1092 }
 0x406   : > { %1999 = vrcp.f32 %v1093_v21 }
 0x407   : > { %v1994_v63 = vpop.eup %1993  ;;  %1307 = vmatpush1.xpose.msra.mxu1 %v1159_v3 }
 0x408   : > { %1308 = vmatprep.subr.mxu1 %v1158_v18  ;;  %v1156_v26 = vmul.f32 %v1994_v63, %v2797_v59  ;;  %v1155_v14 = vmul.f32 %v1994_v63, %v2792_v53  ;;  %v1275_v53 = vpop.f32.mrf.mxu0 }
 0x409   : > { %v1090_v32 = vpop.xlane.xlu1 %1089 }
 0x40a   : > { %2001 = vrcp.f32 %v1090_v32  ;;  %v1277_v56 = vpop.f32.mrf.mxu0 }
 0x40b   : > { %v1996_v40 = vpop.eup %1995  ;;  %1309 = vmatpush1.xpose.msra.mxu1 %v1157_v42  ;;  %v1384_v42 = vld [vmem:[#allocation7 + $0x8] sm:$0xff] }
 0x40c   : > { %1310 = vmatprep.subr.mxu1 %v1156_v26  ;;  %v1154_v31 = vmul.f32 %v1996_v40, %v2805_v24  ;;  %v1153_v15 = vmul.f32 %v1996_v40, %v2800_v16  ;;  %v1281_v2 = vpop.f32.mrf.mxu0  ;;  %v1385_v26 = vld [vmem:[#allocation7 + $0x10] sm:$0xff]  ;;  %v1386_v40 = vld [vmem:[#allocation7 + $0x18] sm:$0xff] }
 0x40d   : > { %v1087_v38 = vpop.xlane.xlu1 %1086  ;;  %v1081_v59 = vpop.xlane.xlu0 %1080 }
 0x40e   : > { %2003 = vrcp.f32 %v1087_v38 }
 0x40f   : > { %v1998_v1 = vpop.eup %1997  ;;  %1311 = vmatpush1.xpose.msra.mxu1 %v1155_v14 }
 0x410   : > { %1312 = vmatprep.subr.mxu1 %v1154_v31  ;;  %v1152_v36 = vmul.f32 %v1998_v1, %v2813_v19  ;;  %v1151_v23 = vmul.f32 %v1998_v1, %v2809_v5 }
 0x411   : > { %v1084_v37 = vpop.xlane.xlu1 %1083 }
 0x412   : > { %2005 = vrcp.f32 %v1084_v37 }
 0x413   : > { %v2000_v11 = vpop.eup %1999  ;;  %1313 = vmatpush1.xpose.msra.mxu1 %v1153_v15  ;;  %2007 = vrcp.f32 %v1081_v59 }
 0x414   : > { %1314 = vmatprep.subr.mxu1 %v1152_v36  ;;  %v1150_v24 = vmul.f32 %v2000_v11, %v2821_v27  ;;  %v1149_v16 = vmul.f32 %v2000_v11, %v2817_v49  ;;  %v2013_v36 = vld [vmem:[%s2476_s3 + $0x8] sm:$0xff] }
 0x415   : > { %v1078_v45 = vpop.xlane.xlu1 %1077  ;;  %v1075_v17 = vpop.xlane.xlu0 %1074 }
 0x416   : > { %2009 = vrcp.f32 %v1078_v45 }
 0x417   : > { %v2002_v12 = vpop.eup %2001  ;;  %1315 = vmatpush1.xpose.msra.mxu1 %v1151_v23  ;;  %2011 = vrcp.f32 %v1075_v17 }
 0x418   : > { %1316 = vmatprep.subr.mxu1 %v1150_v24  ;;  %v1148_v19 = vmul.f32 %v2002_v12, %v2829_v61  ;;  %v1147_v5 = vmul.f32 %v2002_v12, %v2825_v29 }
 0x419   : > { %v1180_v7 = vpop.permute.xlu1 %1179 }
 0x41a   : > { %v1278_v48 = vadd.f32 %v1277_v56, %v1180_v7 }
 0x41b   : > { %1317 = vmatpush1.xpose.msra.mxu1 %v1149_v16  ;;  %v2004_v55 = vpop.eup %2003  ;;  %v2015_v16 = vld [vmem:[%s2476_s3 + $0x18] sm:$0xff] }
 0x41c   : > { %1318 = vmatprep.subr.mxu1 %v1148_v19  ;;  %1362 = vmatprep.mubr.f32.mxu1 %v1278_v48  ;;  %v1146_v27 = vmul.f32 %v2004_v55, %v2835_v60  ;;  %v1145_v49 = vmul.f32 %v2004_v55, %v2831_v33  ;;  %v1283_v60 = vpop.f32.mrf.mxu0  ;;  %v2016_v48 = vld [vmem:[%s2476_s3 + $0x10] sm:$0xff] }
 0x41d   : > { %v1190_v0 = vpop.permute.xlu1 %1189 }
 0x41f   : > { %v2006_v6 = vpop.eup %2005  ;;  %1319 = vmatpush1.xpose.msra.mxu1 %v1147_v5 }
 0x420   : > { %1320 = vmatprep.subr.mxu1 %v1146_v27  ;;  %v1144_v10 = vmul.f32 %v2006_v6, %v2847_v44  ;;  %v2008_v51 = vpop.eup %2007  ;;  %v1143_v61 = vmul.f32 %v2006_v6, %v2841_v35  ;;  %v1287_v44 = vpop.f32.mrf.mxu0 }
 0x421   : > { %v1142_v4 = vmul.f32 %v2008_v51, %v2839_v57  ;;  %v1141_v29 = vmul.f32 %v2008_v51, %v2837_v34  ;;  %v1185_v35 = vpop.permute.xlu0 %1184  ;;  %v1276_v34 = vadd.f32 %v1275_v53, %v1180_v7  ;;  %v2014_v53 = vld [vmem:[%s2476_s3] sm:$0xff] }
 0x422   : > { %v1289_v28 = vpop.f32.mrf.mxu0  ;;  %v1284_v62 = vadd.f32 %v1283_v60, %v1185_v35 }
 0x423   : > { %1321 = vmatpush1.xpose.msra.mxu1 %v1145_v49  ;;  %v2010_v20 = vpop.eup %2009  ;;  %v1290_v8 = vadd.f32 %v1289_v28, %v1190_v0 }
 0x424   : > { %1322 = vmatprep.subr.mxu1 %v1144_v10  ;;  %v1140_v22 = vmul.f32 %v2010_v20, %v2853_v47  ;;  %v2012_v25 = vpop.eup %2011  ;;  %v1139_v33 = vmul.f32 %v2010_v20, %v2849_v39  ;;  %v1293_v46 = vpop.f32.mrf.mxu0  ;;  %v1282_v47 = vadd.f32 %v1281_v2, %v1185_v35 }
 0x425   : > { %v1138_v54 = vmul.f32 %v2012_v25, %v2857_v13  ;;  %v1137_v57 = vmul.f32 %v2012_v25, %v2855_v50  ;;  %v1195_v39 = vpop.permute.xlu1 %1194  ;;  %v1288_v13 = vadd.f32 %v1287_v44, %v1190_v0  ;;  %v1383_v50 = vld [vmem:[#allocation7] sm:$0xff] }
 0x426   : > { %v1295_v52 = vpop.f32.mrf.mxu0  ;;  %v1294_v43 = vadd.f32 %v1293_v46, %v1195_v39  ;;  %1782 = vmatprep.mubr.msk.f32.mxu0 %vm443_vm0, %v1383_v50 }
 0x427   : > { %1323 = vmatpush1.xpose.msra.mxu1 %v1143_v61  ;;  %v1296_v30 = vadd.f32 %v1295_v52, %v1195_v39 }
 0x428   : > { %1324 = vmatprep.subr.mxu1 %v1142_v4 }
 0x429   : > { %v1394_v38 = vpop.permute.xlu1 %1393 }
 0x42b   : > { %1325 = vmatpush1.xpose.msra.mxu1 %v1141_v29 }
 0x42c   : > { %1326 = vmatprep.subr.mxu1 %v1140_v22 }
 0x42d   : > { %v1399_v14 = vpop.permute.xlu1 %1398 }
 0x42f   : > { %1327 = vmatpush1.xpose.msra.mxu1 %v1139_v33 }
 0x430   : > { %1328 = vmatprep.subr.mxu1 %v1138_v54 }
 0x431   : > { %v1404_v31 = vpop.permute.xlu1 %1403 }
 0x433   : > { %1329 = vmatpush1.xpose.msra.mxu1 %v1137_v57 }
 0x435   : > { %v1409_v45 = vpop.permute.xlu1 %1408 }
 0x436   : > { %1363 = vmatmul.mubr.f32.vlgmr.msra.gmra.mxu1 %v1276_v34 }
 0x437   : > { %1367 = vmatprep.mubr.f32.mxu1 %v1284_v62 }
 0x43a   : > { %1368 = vmatmul.mubr.f32.gmra.mxu1 %v1282_v47 }
 0x43b   : > { %1372 = vmatprep.mubr.f32.mxu1 %v1290_v8 }
 0x43e   : > { %1373 = vmatmul.mubr.f32.gmra.mxu1 %v1288_v13 }
 0x43f   : > { %1377 = vmatprep.mubr.f32.mxu1 %v1296_v30 }
 0x442   : > { %1378 = vmatmul.mubr.f32.gmra.mxu1 %v1294_v43 }
 0x4f6   : > { %v1364_v58 = vpop.f32.mrf.mxu1 }
 0x4f8   : > { %v1366_v9 = vpop.f32.mrf.mxu1 }
 0x4fa   : > { %v1369_v41 = vpop.f32.mrf.mxu1 }
 0x4fc   : > { %v1371_v21 = vpop.f32.mrf.mxu1 }
 0x4fe   : > { %v1374_v3 = vpop.f32.mrf.mxu1 }
 0x500   : > { %v1376_v18 = vpop.f32.mrf.mxu1 }
 0x502   : > { %v1379_v63 = vpop.f32.mrf.mxu1 }
 0x503   : > { %1774 = vmatprep.subr.mxu0 %v1379_v63 }
 0x504   : > { %v1381_v32 = vpop.f32.mrf.mxu1  ;;  %1775 = vmatpush3.msra.mxu0 %v1379_v63 }
 0x505   : > { %1776 = vmatprep.subr.mxu0 %v1374_v3 }
 0x506   : > { %1777 = vmatpush3.msra.mxu0 %v1374_v3 }
 0x507   : > { %1778 = vmatprep.subr.mxu0 %v1369_v41 }
 0x508   : > { %1779 = vmatpush3.msra.mxu0 %v1369_v41 }
 0x509   : > { %1780 = vmatprep.subr.mxu0 %v1364_v58 }
 0x50a   : > { %1781 = vmatpush3.msra.mxu0 %v1364_v58 }
 0x50b   : > { %1783 = vmatmul.mubr.msk.f32.vlgmr.msra.gmra.mxu0 %vm443_vm0, %v1384_v42 }
 0x50c   : > { %1785 = vmatprep.mubr.msk.f32.mxu0 %vm443_vm0, %v1385_v26 }
 0x50f   : > { %1786 = vmatmul.mubr.msk.f32.gmra.mxu0 %vm443_vm0, %v1386_v40 }
 0x5cb   : > { %v1784_v1 = vpop.f32.mrf.mxu0 }
 0x5cc   : > { %v1495_v37 = vadd.f32 %v1784_v1, %v1399_v14 }
 0x5cd   : > { %v1489_v15 = vpop.f32.mrf.mxu0 }
 0x5ce   : > { %v1509_v11 = vadd.f32 %v2013_v36, %v1495_v37  ;;  %v1490_v59 = vadd.f32 %v1489_v15, %v1394_v38 }
 0x5cf   : > { %v1787_v23 = vpop.f32.mrf.mxu0 }
 0x5d0   : > { %1513 = vst [vmem:[%s394_s6 + $0x8] sm:$0xff] %v1509_v11  ;;  %v1508_v24 = vadd.f32 %v2014_v53, %v1490_v59  ;;  %v1505_v12 = vadd.f32 %v1787_v23, %v1409_v45 }
 0x5d1   : > { %v1499_v7 = vpop.f32.mrf.mxu0 }
 0x5d2   : > { %1512 = vst [vmem:[%s394_s6] sm:$0xff] %v1508_v24  ;;  %v1511_v56 = vadd.f32 %v2015_v16, %v1505_v12  ;;  %v1500_v19 = vadd.f32 %v1499_v7, %v1404_v31 }
 0x5d4   : > { %1515 = vst [vmem:[%s394_s6 + $0x18] sm:$0xff] %v1511_v56  ;;  %v1510_v17 = vadd.f32 %v2016_v48, %v1500_v19 }
 0x5d6   : > { %1514 = vst [vmem:[%s394_s6 + $0x10] sm:$0xff] %v1510_v17 }
 0x5d7   : > { %2112 = shalt.err (!%p2109_p2)
}
 0x5d8   : > { %s2113_s3 = scalar_lea.hbm %s2935_s19, 512  ;;  %s2117_s8 = scalar_lea.hbm %s3060_s16, 2048 }
 0x5d9   : > { %p2114_p5 = scmp.ne.s32.totalorder %s2935_s19, %s2113_s3  ;;  %p2118_p10 = scmp.lt.s32.totalorder %s2935_s19, %s3060_s16 }
 0x5da   : > { %p2119_p8 = scmp.lt.s32.totalorder %s2117_s8, %s2113_s3 }
 0x5db   : > { %p2115_p12 = pnand %p2114_p5, %p2394_p13 }
 0x5dc   : > { %p2120_p3 = por %p2119_p8, %p2118_p10 }
 0x5dd   : > { %p2116_p1 = pneg %p2115_p12 }
 0x5df   : > { %p2121_p4 = pnand %p2120_p3, %p2116_p1 }
 0x5e1   : > { %2124 = shalt.err (!%p2121_p4)
}
 0x5e2   : > { %s2239_s24 = smov 128   ;;  %s2240_s17 = smov 256  }
 0x5e3   : > { %s2241_s12 = smov 8  }
 0x5e4   : > { %1796 = dma.vmem_to_hbm [thread:$0]  (%p2394_p13), %s2929_s4, 512, %s2935_s19, %s1517_s22, %s2239_s24, %s2240_s17, %s2241_s12  }
 0x5e5 PF: > { %s3061_s21 = sld [smem:[#allocation13_spill]]  ;;  %p1816_p6 = scmp.ge.s32.totalorder %s2227_s15, 2 }
 0x5e6   : > { %s3062_s6 = sld [smem:[#allocation16_spill]] }
 0x5eb   : > { %s1546_s26 = sand.u32 1, %s3061_s21  }
 0x5ec   : > { %p3063_p0 = scmp.ne.s32.totalorder %s3062_s6, 0  ;;  %s1547_s3 = scalar_lea.sflag [#allocation4], %s1546_s26 }
 0x5ee   : > { %p1810_p7 = pnand %p1816_p6, %p3063_p0 }
 0x5f0   : > { %p1811_p9 = pneg %p1810_p7 }
 0x5f2   : > { %2182 = dma.done.wait (%p1811_p9), %s1547_s3, 512  }
 0x5f3   : > { %2184 = vsyncadd (%p1811_p9), %s1547_s3, 4294966784  ;;  %s27_s15 = sadd.s32 1, %s2227_s15   ;;  %s3064_s20 = smov %s2417_s27 }
 0x5f4   : > { %p24_p11 = scmp.ge.s32.totalorder %s27_s15, 6   ;;  %s3065_s4 = sld [smem:[#allocation17_spill]] }
 0x5f5   : > { %s3066_s7 = sld [smem:[#allocation19_spill]]  ;;  %s3067_s27 = smov %s2191_s28 }
 0x5f6   : > { %s3068_s28 = smov %s2195_s29  ;;  %s3069_s29 = smov %s2444_s23 }
 0x5f7   : > { %s3070_s30 = smov %s2203_s9  ;;  %s3071_s9 = smov %s2207_s10 }
 0x5f8   : > { %s3072_s10 = smov %s3064_s20  ;;  %s3073_s11 = smov %s2219_s13 }
 0x5f9   : > { %s3074_s12 = smov %s2223_s14  ;;  %26 = sbr.rel (!%p24_p11) target bundleno = 18 (0x12), region = 114 }
 0x5fa   : > { %s3075_s13 = smov %s3065_s4 }
 0x5fb   : > { %s3076_s14 = smov %s3066_s7 }
 0x5fe   :  { %1552 = vsyncpa [#allocation3], 1 }
 0x5ff   :  { %1554 = vsyncpa [#allocation3 + $0x1], 1 }
 0x600   :  { %1555 = vsyncpa [#allocation6], 1 }
 0x601   :  { %1557 = vsyncpa [#allocation6 + $0x1], 1 }
 0x602   :  { %1558 = vsyncpa [#allocation4], 1 }
 0x603   :  { %1560 = vsyncpa [#allocation4 + $0x1], 1 }

</bundles_post_ra>
